<compile_context>
chip_gen: v7x
topology: tpu7x:2x2x1
jax: 0.10.0
libtpu: 0.0.40
codegen_flags: <defaults>
</compile_context>

<pallas_src>
import math

import jax
import jax.numpy as jnp
from jax import lax
from jax.experimental import pallas as pl
from jax.experimental.pallas import tpu as pltpu


def _round_up(x, m):
    return ((x + m - 1) // m) * m


def pose_decoder_kernel(feat_ref, w1_ref, b1_ref, w2_ref, b2_ref,
                        wh_ref, bh_ref, out_ref):
    # feat arrives bf16 (preferred) or f32; cast is a no-op for bf16.
    feat = feat_ref[...].astype(jnp.bfloat16)              # (TB, F)

    # mlp1 + relu  (bf16 MXU inputs, f32 accumulation, f32 activations)
    h1 = jnp.dot(feat, w1_ref[...],
                 preferred_element_type=jnp.float32) + b1_ref[...]
    h1 = jnp.maximum(h1, 0.0)

    # mlp2 + relu
    h2 = jnp.dot(h1.astype(jnp.bfloat16), w2_ref[...],
                 preferred_element_type=jnp.float32) + b2_ref[...]
    h2 = jnp.maximum(h2, 0.0)

    # Fused heads: cols 0:3 = trans(pre-tanh), 3:7 = quat(pre-norm, with
    # [1,0,0,0] folded into the bias), col 7 = zero pad.  Explicit bf16 operands
    # -> single MXU pass; f32 accumulation.
    heads = jnp.dot(h2.astype(jnp.bfloat16), wh_ref[...].astype(jnp.bfloat16),
                    preferred_element_type=jnp.float32) + bh_ref[...]   # (TB, 8)

    col = lax.broadcasted_iota(jnp.int32, heads.shape, 1)
    is_trans = col < 3
    is_quat = jnp.logical_and(col >= 3, col < 7)

    q_sq = jnp.where(is_quat, heads * heads, 0.0)
    inv_norm = lax.rsqrt(1e-12 + jnp.sum(q_sq, axis=-1, keepdims=True))  # (TB, 1)

    # trans cols -> tanh ; quat cols -> * inv_norm ; pad col stays 0.
    out_ref[...] = jnp.where(is_trans, jnp.tanh(heads), heads * inv_norm)


def pose_decoder(feat, params, *, max_tile_rows=512):
    """feat: (B, feat_len), bf16 preferred (f32 accepted).  Returns (B, 7) f32."""
    w1, b1, w2, b2, wh, bh = params
    B, F = feat.shape

    # Row tile: as large as the cap allows, multiple of 16 (bf16 sublane pack),
    # but no larger than ~half of B so large batches give a >=2-length grid and
    # both v7x TensorCores get work via the "parallel" axis.
    tb = min(max_tile_rows, _round_up(pl.cdiv(B, 2), 16))
    grid = (pl.cdiv(B, tb),)   # ragged last tile is masked by Pallas

    out_slab = pl.pallas_call(
        pose_decoder_kernel,
        out_shape=jax.ShapeDtypeStruct((B, 8), jnp.float32),
        grid=grid,
        in_specs=[
            pl.BlockSpec((tb, F), lambda i: (i, 0)),       # feat (row-tiled)
            pl.BlockSpec((F, 512), lambda i: (0, 0)),      # W1 (resident)
            pl.BlockSpec((1, 512), lambda i: (0, 0)),      # b1
            pl.BlockSpec((512, 256), lambda i: (0, 0)),    # W2 (resident)
            pl.BlockSpec((1, 256), lambda i: (0, 0)),      # b2
            pl.BlockSpec((256, 8), lambda i: (0, 0)),      # fused head weight
            pl.BlockSpec((1, 8), lambda i: (0, 0)),        # fused head bias
        ],
        out_specs=pl.BlockSpec((tb, 8), lambda i: (i, 0)),
        compiler_params=pltpu.CompilerParams(
            dimension_semantics=("parallel",),
            vmem_limit_bytes=48 * 1024 * 1024,   # headroom for big F/tb, < v7x 64 MiB
        ),
    )(feat, w1, b1, w2, b2, wh, bh)

    return out_slab[:, :7]


def init_params(key, feat_len):
    """Init mimicking PyTorch nn.Linear defaults (uniform +/- 1/sqrt(fan_in)).
    Weights stored (in, out).  W1/W2 in bf16 (halves weight DMA); trans/quat
    heads fused into (256, 8)/(1, 8) f32 with a zero pad column; the qconst
    [1,0,0,0] is folded into the (zero-initialized) quat bias."""
    def linear(k, fan_in, fan_out):
        kw, kb = jax.random.split(k)
        bound = 1.0 / math.sqrt(fan_in)
        w = jax.random.uniform(kw, (fan_in, fan_out), jnp.float32, -bound, bound)
        b = jax.random.uniform(kb, (1, fan_out), jnp.float32, -bound, bound)
        return w, b

    k1, k2, k3, k4 = jax.random.split(key, 4)
    w1, b1 = linear(k1, feat_len, 512)
    w2, b2 = linear(k2, 512, 256)
    wt, bt = linear(k3, 256, 3)
    wq, _ = linear(k4, 256, 4)
    bq = jnp.zeros((1, 4), jnp.float32)                    # self.quat.bias.data.zero_()
    qconst = jnp.array([[1.0, 0.0, 0.0, 0.0]], jnp.float32)

    wh = jnp.concatenate([wt, wq, jnp.zeros((256, 1), jnp.float32)], axis=1)
    bh = jnp.concatenate([bt, bq + qconst, jnp.zeros((1, 1), jnp.float32)], axis=1)

    return (w1.astype(jnp.bfloat16), b1, w2.astype(jnp.bfloat16), b2, wh, bh)


def pose_decoder_ref(feat, params):
    """Pure-JAX reference with the same precision path (bf16 matmul inputs, f32 accum)."""
    w1, b1, w2, b2, wh, bh = params
    f = feat.astype(jnp.bfloat16)
    h1 = jnp.maximum(jnp.dot(f, w1, preferred_element_type=jnp.float32) + b1, 0.0)
    h2 = jnp.maximum(jnp.dot(h1.astype(jnp.bfloat16), w2,
                             preferred_element_type=jnp.float32) + b2, 0.0)
    heads = jnp.dot(h2.astype(jnp.bfloat16), wh.astype(jnp.bfloat16),
                    preferred_element_type=jnp.float32) + bh
    trans = jnp.tanh(heads[:, :3])
    q = heads[:, 3:7]
    q = q * lax.rsqrt(1e-12 + jnp.sum(q * q, axis=-1, keepdims=True))
    return jnp.concatenate([trans, q], axis=-1)


if __name__ == "__main__":
    key = jax.random.PRNGKey(0)
    k_feat, k_feat2, k_params = jax.random.split(key, 3)

    feat_len = 32
    params = init_params(k_params, feat_len)

    # Small shape consistent with the module: B x feat_len, bf16 feat (upstream dtype).
    B = 2
    feat = jax.random.normal(k_feat, (B, feat_len), jnp.float32).astype(jnp.bfloat16)
    out = jax.block_until_ready(pose_decoder(feat, params))
    ref = pose_decoder_ref(feat, params)
    assert out.shape == (B, 7), out.shape
    assert jnp.allclose(out, ref, atol=2e-4, rtol=2e-4), (out, ref)

    # Ragged / multi-tile coverage: B not a multiple of the row tile, grid > 1
    # (exercises the Pallas-masked last block that replaced the wrapper jnp.pad).
    B2 = 37
    feat2 = jax.random.normal(k_feat2, (B2, feat_len), jnp.float32).astype(jnp.bfloat16)
    out2 = jax.block_until_ready(pose_decoder(feat2, params))
    ref2 = pose_decoder_ref(feat2, params)
    assert out2.shape == (B2, 7), out2.shape
    assert jnp.allclose(out2, ref2, atol=2e-4, rtol=2e-4), (out2, ref2)

    print("KERNEL_OK")
</pallas_src>

<mosaic_0001>
module attributes {stable_mosaic.version = 11 : i64} {
  func.func @pose_decoder_kernel(%arg0: i32, %arg1: memref<16x32xbf16, #tpu.memory_space<vmem>>, %arg2: memref<32x512xbf16, #tpu.memory_space<vmem>>, %arg3: memref<1x512xf32, #tpu.memory_space<vmem>>, %arg4: memref<512x256xbf16, #tpu.memory_space<vmem>>, %arg5: memref<1x256xf32, #tpu.memory_space<vmem>>, %arg6: memref<256x8xf32, #tpu.memory_space<vmem>>, %arg7: memref<1x8xf32, #tpu.memory_space<vmem>>, %arg8: memref<16x8xf32, #tpu.memory_space<vmem>>) attributes {dimension_semantics = [#tpu.dimension_semantics<parallel>], iteration_bounds = array<i64: 1>, scalar_prefetch = 0 : i64, scratch_operands = 0 : i64, tpu.core_type = #tpu.core_type<tc>, window_params = [{transform_indices = @transform_0, window_bounds = array<i64: 16, 32>}, {pipeline_mode = #tpu.pipeline_mode<synchronous>, transform_indices = @transform_1, window_bounds = array<i64: 32, 512>}, {pipeline_mode = #tpu.pipeline_mode<synchronous>, transform_indices = @transform_2, window_bounds = array<i64: 1, 512>}, {pipeline_mode = #tpu.pipeline_mode<synchronous>, transform_indices = @transform_3, window_bounds = array<i64: 512, 256>}, {pipeline_mode = #tpu.pipeline_mode<synchronous>, transform_indices = @transform_4, window_bounds = array<i64: 1, 256>}, {pipeline_mode = #tpu.pipeline_mode<synchronous>, transform_indices = @transform_5, window_bounds = array<i64: 256, 8>}, {pipeline_mode = #tpu.pipeline_mode<synchronous>, transform_indices = @transform_6, window_bounds = array<i64: 1, 8>}, {transform_indices = @transform_7, window_bounds = array<i64: 16, 8>}]} {
    %c0 = arith.constant 0 : index
    %c0_0 = arith.constant 0 : index
    %0 = vector.load %arg1[%c0, %c0_0] : memref<16x32xbf16, #tpu.memory_space<vmem>>, vector<16x32xbf16>
    %c0_1 = arith.constant 0 : index
    %c0_2 = arith.constant 0 : index
    %1 = vector.load %arg2[%c0_1, %c0_2] : memref<32x512xbf16, #tpu.memory_space<vmem>>, vector<32x512xbf16>
    %cst = arith.constant dense<0.000000e+00> : vector<16x512xf32>
    %2 = tpu.matmul %0, %1, %cst {dimension_numbers = #tpu.dot_dimension_numbers<[1], [0], [0], [1], [0, 0, 1, 1], [], []>} : vector<16x32xbf16>, vector<32x512xbf16>, vector<16x512xf32> -> vector<16x512xf32>
    %c0_3 = arith.constant 0 : index
    %c0_4 = arith.constant 0 : index
    %3 = vector.load %arg3[%c0_3, %c0_4] : memref<1x512xf32, #tpu.memory_space<vmem>>, vector<1x512xf32>
    %4 = vector.broadcast %3 : vector<1x512xf32> to vector<16x512xf32>
    %5 = arith.addf %2, %4 : vector<16x512xf32>
    %cst_5 = arith.constant 0.000000e+00 : f32
    %6 = vector.broadcast %cst_5 : f32 to vector<16x512xf32>
    %7 = arith.maximumf %5, %6 : vector<16x512xf32>
    %8 = arith.truncf %7 : vector<16x512xf32> to vector<16x512xbf16>
    %c0_6 = arith.constant 0 : index
    %c0_7 = arith.constant 0 : index
    %9 = vector.load %arg4[%c0_6, %c0_7] : memref<512x256xbf16, #tpu.memory_space<vmem>>, vector<512x256xbf16>
    %cst_8 = arith.constant dense<0.000000e+00> : vector<16x256xf32>
    %10 = tpu.matmul %8, %9, %cst_8 {dimension_numbers = #tpu.dot_dimension_numbers<[1], [0], [0], [1], [0, 0, 1, 1], [], []>} : vector<16x512xbf16>, vector<512x256xbf16>, vector<16x256xf32> -> vector<16x256xf32>
    %c0_9 = arith.constant 0 : index
    %c0_10 = arith.constant 0 : index
    %11 = vector.load %arg5[%c0_9, %c0_10] : memref<1x256xf32, #tpu.memory_space<vmem>>, vector<1x256xf32>
    %12 = vector.broadcast %11 : vector<1x256xf32> to vector<16x256xf32>
    %13 = arith.addf %10, %12 : vector<16x256xf32>
    %cst_11 = arith.constant 0.000000e+00 : f32
    %14 = vector.broadcast %cst_11 : f32 to vector<16x256xf32>
    %15 = arith.maximumf %13, %14 : vector<16x256xf32>
    %16 = arith.truncf %15 : vector<16x256xf32> to vector<16x256xbf16>
    %c0_12 = arith.constant 0 : index
    %c0_13 = arith.constant 0 : index
    %17 = vector.load %arg6[%c0_12, %c0_13] : memref<256x8xf32, #tpu.memory_space<vmem>>, vector<256x8xf32>
    %18 = arith.truncf %17 : vector<256x8xf32> to vector<256x8xbf16>
    %cst_14 = arith.constant dense<0.000000e+00> : vector<16x8xf32>
    %19 = tpu.matmul %16, %18, %cst_14 {dimension_numbers = #tpu.dot_dimension_numbers<[1], [0], [0], [1], [0, 0, 1, 1], [], []>} : vector<16x256xbf16>, vector<256x8xbf16>, vector<16x8xf32> -> vector<16x8xf32>
    %c0_15 = arith.constant 0 : index
    %c0_16 = arith.constant 0 : index
    %20 = vector.load %arg7[%c0_15, %c0_16] : memref<1x8xf32, #tpu.memory_space<vmem>>, vector<1x8xf32>
    %21 = vector.broadcast %20 : vector<1x8xf32> to vector<16x8xf32>
    %22 = arith.addf %19, %21 : vector<16x8xf32>
    %23 = tpu.iota {dimensions = array<i32: 1>} : vector<16x8xi32>
    %c3_i32 = arith.constant 3 : i32
    %24 = vector.broadcast %c3_i32 : i32 to vector<16x8xi32>
    %25 = arith.cmpi slt, %23, %24 : vector<16x8xi32>
    %c3_i32_17 = arith.constant 3 : i32
    %26 = vector.broadcast %c3_i32_17 : i32 to vector<16x8xi32>
    %27 = arith.cmpi sge, %23, %26 : vector<16x8xi32>
    %c7_i32 = arith.constant 7 : i32
    %28 = vector.broadcast %c7_i32 : i32 to vector<16x8xi32>
    %29 = arith.cmpi slt, %23, %28 : vector<16x8xi32>
    %30 = arith.andi %27, %29 : vector<16x8xi1>
    %31 = arith.mulf %22, %22 : vector<16x8xf32>
    %cst_18 = arith.constant 0.000000e+00 : f32
    %32 = vector.broadcast %cst_18 : f32 to vector<16x8xf32>
    %33 = arith.select %30, %31, %32 : vector<16x8xi1>, vector<16x8xf32>
    %cst_19 = arith.constant dense<0.000000e+00> : vector<16xf32>
    %34 = vector.multi_reduction <add>, %33, %cst_19 [1] : vector<16x8xf32> to vector<16xf32>
    %35 = vector.shape_cast %34 : vector<16xf32> to vector<16x1xf32>
    %cst_20 = arith.constant 9.99999996E-13 : f32
    %36 = vector.broadcast %cst_20 : f32 to vector<16x1xf32>
    %37 = arith.addf %36, %35 : vector<16x1xf32>
    %38 = math.rsqrt %37 : vector<16x1xf32>
    %39 = math.tanh %22 : vector<16x8xf32>
    %40 = vector.broadcast %38 : vector<16x1xf32> to vector<16x8xf32>
    %41 = arith.mulf %22, %40 : vector<16x8xf32>
    %42 = arith.select %25, %39, %41 : vector<16x8xi1>, vector<16x8xf32>
    %c0_21 = arith.constant 0 : index
    %c0_22 = arith.constant 0 : index
    %43 = vector.load %arg8[%c0_21, %c0_22] : memref<16x8xf32, #tpu.memory_space<vmem>>, vector<16x8xf32>
    tpu.vector_store %arg8[%c0_21, %c0_22], %42 {strides = array<i32>} : memref<16x8xf32, #tpu.memory_space<vmem>>, vector<16x8xf32>,
    return
  }
  func.func @transform_0(%arg0: i32) -> (i32, i32) {
    %c0_i32 = arith.constant 0 : i32
    %c0_i32_0 = arith.constant 0 : i32
    return %arg0, %c0_i32 : i32, i32
  }
  func.func @transform_1(%arg0: i32) -> (i32, i32) {
    %c0_i32 = arith.constant 0 : i32
    %c0_i32_0 = arith.constant 0 : i32
    %c0_i32_1 = arith.constant 0 : i32
    return %c0_i32, %c0_i32_0 : i32, i32
  }
  func.func @transform_2(%arg0: i32) -> (i32, i32) {
    %c0_i32 = arith.constant 0 : i32
    %c0_i32_0 = arith.constant 0 : i32
    %c0_i32_1 = arith.constant 0 : i32
    return %c0_i32, %c0_i32_0 : i32, i32
  }
  func.func @transform_3(%arg0: i32) -> (i32, i32) {
    %c0_i32 = arith.constant 0 : i32
    %c0_i32_0 = arith.constant 0 : i32
    %c0_i32_1 = arith.constant 0 : i32
    return %c0_i32, %c0_i32_0 : i32, i32
  }
  func.func @transform_4(%arg0: i32) -> (i32, i32) {
    %c0_i32 = arith.constant 0 : i32
    %c0_i32_0 = arith.constant 0 : i32
    %c0_i32_1 = arith.constant 0 : i32
    return %c0_i32, %c0_i32_0 : i32, i32
  }
  func.func @transform_5(%arg0: i32) -> (i32, i32) {
    %c0_i32 = arith.constant 0 : i32
    %c0_i32_0 = arith.constant 0 : i32
    %c0_i32_1 = arith.constant 0 : i32
    return %c0_i32, %c0_i32_0 : i32, i32
  }
  func.func @transform_6(%arg0: i32) -> (i32, i32) {
    %c0_i32 = arith.constant 0 : i32
    %c0_i32_0 = arith.constant 0 : i32
    %c0_i32_1 = arith.constant 0 : i32
    return %c0_i32, %c0_i32_0 : i32, i32
  }
  func.func @transform_7(%arg0: i32) -> (i32, i32) {
    %c0_i32 = arith.constant 0 : i32
    %c0_i32_0 = arith.constant 0 : i32
    return %arg0, %c0_i32 : i32, i32
  }
}

</mosaic_0001>

<bundles_post_ra>
// kernel: tpu_custom_call.1
= control target key start
LH: loop header
LB: loop body
LE: loop exit
PB: predicated region body
PF: predicated region fallthrough
CT: control target
= control target key end

     0   :  { %12 = vsyncpa [#allocation3], 0  ;;  %s1434_s0 = inlined_call_operand.vmem [shape: bf16[2,32], index: 0, kind: input, shape index: {}]   ;;  %s1435_s1 = inlined_call_operand.vmem [shape: bf16[32,512], index: 1, kind: input, shape index: {}]   ;;  %s1436_s2 = inlined_call_operand.vmem [shape: f32[1,512], index: 2, kind: input, shape index: {}]   ;;  %s1437_s3 = inlined_call_operand.hbm [shape: bf16[512,256], index: 3, kind: input, shape index: {}]   ;;  %s1438_s4 = inlined_call_operand.vmem [shape: f32[1,256], index: 4, kind: input, shape index: {}]   ;;  %s1439_s5 = inlined_call_operand.vmem [shape: f32[256,8], index: 5, kind: input, shape index: {}]   ;;  %s1440_s6 = inlined_call_operand.vmem [shape: f32[1,8], index: 6, kind: input, shape index: {}]   ;;  %s1441_s7 = inlined_call_operand.hbm [shape: f32[2,8], index: 7, kind: output, shape index: {}]  }
   0x1   :  { %13 = vsyncpa [#allocation4], 0  ;;  %s1186_s24 = smov [#allocation2]   ;;  %s1138_s28 = scalar_lea.hbm %s1437_s3, 8192 }
   0x2   :  { %s25_s25 = sshll.u32 %s1186_s24, 4  ;;  %p1139_p0 = scmp.ne.s32.totalorder %s1437_s3, %s1138_s28  ;;  %s26_s25 = int_to_ptr.vmem [resolvable:$true] %s25_s25 }
   0x3   :  { %p1142_p1 = scmp.lt.u32.totalorder %s1138_s28, %s1437_s3 }
   0x5   :  { %p1144_p2 = pnand %p1142_p1, %p1139_p0 }
   0x7   :  { %1147 = shalt.err (!%p1144_p2)
}
   0x8   :  { %s1148_s10 = scalar_lea.vmem %s26_s25, 8192  ;;  %p1153_p4 = scmp.lt.s32.totalorder %s26_s25, %s26_s25 }
   0x9   :  { %p1149_p3 = scmp.ne.s32.totalorder %s26_s25, %s1148_s10  ;;  %p1154_p5 = scmp.lt.s32.totalorder %s1148_s10, %s1148_s10 }
   0xb   :  { %p1155_p6 = por %p1154_p5, %p1153_p4 }
   0xd   :  { %p1156_p7 = pnand %p1155_p6, %p1149_p3 }
   0xf   :  { %1159 = shalt.err (!%p1156_p7)
}
  0x10   :  { %s1187_s11 = smov 128   ;;  %s1188_s12 = smov 8  }
  0x11   :  { %31 = dma.hbm_to_vmem [thread:$0]  %s1437_s3, 8192, %s26_s25, [#allocation3], %s1187_s11, %s1187_s11, %s1188_s12  }
  0x12   :  { %1182 = dma.done.wait [#allocation3], 8192  }
  0x13   :  { %1183 = vsyncadd [#allocation3], 4294959104  ;;  %v1189_v0 = vmov 0   ;;  %v60_v1 = vlaneseq  ;;  %v1190_v2 = vmov 1966171168   ;;  %vm177_vm0 = vcmask 261120  }
  0x14   :  { %213 = vmatprep.mubr.bf16.mxu0 %v1189_v0  ;;  %v93_v3 = vunpack.c.l.s4 %v1190_v2  ;;  %v1022_v6 = vld [vmem:[%s1435_s1 + $0x4] ss:$16 sps:$4 sm:$0xff]   ;;  %v1024_v7 = vld [vmem:[%s1435_s1] ss:$16 sps:$4 sm:$0xff]   ;;  %v1030_v25 = vld [vmem:[%s1435_s1 + $0xc] ss:$16 sps:$4 sm:$0xff]  }
  0x15   :  { %v1247_v4 = vshrl.u32 %v60_v1, 7  ;;  %181 = vmatprep.subr.bf16.mxu0 %v1022_v6  ;;  %v1025_v8 = vld [vmem:[%s1435_s1 + $0x24] ss:$16 sps:$4 sm:$0xff]   ;;  %v1027_v9 = vld [vmem:[%s1435_s1 + $0x20] ss:$16 sps:$4 sm:$0xff]   ;;  %vm873_vm4 = vcmask 64512  }
  0x16   :  { %v94_v5 = vunpack.c.0.s8 %v93_v3  ;;  %v42_v10 = vld [vmem:[%s1434_s0] sm:$0x1]  ;;  %182 = vmatpush1.bf16.msra.mxu0 %v1024_v7  ;;  %v43_v12 = vld [vmem:[%s1434_s0 + $0x1] sm:$0x1]  ;;  %v44_v13 = vld [vmem:[%s1434_s0 + $0x2] sm:$0x1] }
  0x17   :  { %v45_v14 = vld [vmem:[%s1434_s0 + $0x3] sm:$0x1]  ;;  %183 = vmatprep.subr.bf16.mxu0 %v1025_v8  ;;  %v46_v15 = vld [vmem:[%s1434_s0 + $0x4] sm:$0x1]  ;;  %v47_v16 = vld [vmem:[%s1434_s0 + $0x5] sm:$0x1]  ;;  %v88_v18 = vcombine.low %v42_v10, %v43_v12 }
  0x18   :  { %v97_v11 = vsub.s32 %v94_v5, %v1247_v4  ;;  %v48_v17 = vld [vmem:[%s1434_s0 + $0x6] sm:$0x1]  ;;  %v89_v19 = vcombine.low %v44_v13, %v45_v14  ;;  %v49_v20 = vld [vmem:[%s1434_s0 + $0x7] sm:$0x1]  ;;  %v90_v21 = vcombine.low %v46_v15, %v47_v16  ;;  %v1036_v30 = vld [vmem:[#allocation2] ss:$8 sps:$4 sm:$0xff]  }
  0x19   :  { %v91_v22 = vcombine.low %v48_v17, %v49_v20  ;;  %v1034_v29 = vld [vmem:[#allocation2 + $0x4] ss:$8 sps:$4 sm:$0xff]   ;;  %v1037_v33 = vld [vmem:[#allocation2 + $0x14] ss:$8 sps:$4 sm:$0xff]   ;;  %v1039_v34 = vld [vmem:[#allocation2 + $0x10] ss:$8 sps:$4 sm:$0xff]  }
  0x1a   :  { %v98_v23 = vrot.slane %v88_v18, %v97_v11  ;;  %v105_v24 = vrot.slane %v89_v19, %v97_v11  ;;  %184 = vmatpush1.bf16.msra.mxu0 %v1027_v9  ;;  %v112_v26 = vrot.slane %v90_v21, %v97_v11  ;;  %675 = vmatprep.subr.bf16.mxu1 %v1034_v29  ;;  %v1040_v36 = vld [vmem:[#allocation2 + $0x24] ss:$8 sps:$4 sm:$0xff]   ;;  %v1028_v37 = vld [vmem:[%s1435_s1 + $0x8] ss:$16 sps:$4 sm:$0xff]   ;;  %v1046_v41 = vld [vmem:[#allocation2 + $0x34] ss:$8 sps:$4 sm:$0xff]  }
  0x1b   :  { %v119_v27 = vrot.slane %v91_v22, %v97_v11  ;;  %224 = vmatprep.subr.bf16.mxu0 %v1030_v25  ;;  %676 = vmatpush1.bf16.msra.mxu1 %v1036_v30  ;;  %v1033_v39 = vld [vmem:[%s1435_s1 + $0x2c] ss:$16 sps:$4 sm:$0xff]   ;;  %v1045_v40 = vld [vmem:[#allocation2 + $0x20] ss:$8 sps:$4 sm:$0xff]   ;;  %v1051_v44 = vld [vmem:[#allocation2 + $0x30] ss:$8 sps:$4 sm:$0xff]  }
  0x1c   :  { %v120_v28 = vcombine.low %v98_v23, %v105_v24  ;;  %677 = vmatprep.subr.bf16.mxu1 %v1037_v33  ;;  %v1031_v42 = vld [vmem:[%s1435_s1 + $0x28] ss:$16 sps:$4 sm:$0xff]   ;;  %v1044_v43 = vld [vmem:[#allocation2 + $0x104] ss:$8 sps:$4 sm:$0xff]   ;;  %v1050_v47 = vld [vmem:[#allocation2 + $0x114] ss:$8 sps:$4 sm:$0xff]  }
  0x1d   :  { %v121_v31 = vcombine.low %v112_v26, %v119_v27  ;;  %v1052_v45 = vld [vmem:[#allocation2 + $0x44] ss:$8 sps:$4 sm:$0xff]   ;;  %v1042_v46 = vld [vmem:[#allocation2 + $0x100] ss:$8 sps:$4 sm:$0xff]   ;;  %v1058_v49 = vld [vmem:[#allocation2 + $0x54] ss:$8 sps:$4 sm:$0xff]  }
  0x1e   :  { %v128_v32 = vrot.slane %v120_v28, %v97_v11  ;;  %v1057_v48 = vld [vmem:[#allocation2 + $0x40] ss:$8 sps:$4 sm:$0xff]   ;;  %v1048_v50 = vld [vmem:[#allocation2 + $0x110] ss:$8 sps:$4 sm:$0xff]   ;;  %v1056_v51 = vld [vmem:[#allocation2 + $0x124] ss:$8 sps:$4 sm:$0xff]  }
  0x1f   :  { %v135_v35 = vrot.slane %v121_v31, %v97_v11  ;;  %678 = vmatpush1.bf16.msra.mxu1 %v1039_v34  ;;  %v1063_v52 = vld [vmem:[#allocation2 + $0x50] ss:$8 sps:$4 sm:$0xff]   ;;  %v1064_v53 = vld [vmem:[#allocation2 + $0x64] ss:$8 sps:$4 sm:$0xff]   ;;  %v1054_v54 = vld [vmem:[#allocation2 + $0x120] ss:$8 sps:$4 sm:$0xff]  }
  0x20   :  { %679 = vmatprep.subr.bf16.mxu1 %v1040_v36  ;;  %v1062_v55 = vld [vmem:[#allocation2 + $0x134] ss:$8 sps:$4 sm:$0xff]   ;;  %v1069_v56 = vld [vmem:[#allocation2 + $0x60] ss:$8 sps:$4 sm:$0xff]   ;;  %v1060_v58 = vld [vmem:[#allocation2 + $0x130] ss:$8 sps:$4 sm:$0xff]  }
  0x21   :  { %v136_v38 = vcombine.low %v128_v32, %v135_v35  ;;  %v1070_v57 = vld [vmem:[#allocation2 + $0x74] ss:$8 sps:$4 sm:$0xff]   ;;  %v1068_v59 = vld [vmem:[#allocation2 + $0x144] ss:$8 sps:$4 sm:$0xff]   ;;  %v1075_v60 = vld [vmem:[#allocation2 + $0x70] ss:$8 sps:$4 sm:$0xff]  }
  0x22   :  { %v1076_v61 = vld [vmem:[#allocation2 + $0x84] ss:$8 sps:$4 sm:$0xff]   ;;  %v1066_v62 = vld [vmem:[#allocation2 + $0x140] ss:$8 sps:$4 sm:$0xff]   ;;  %v1074_v63 = vld [vmem:[#allocation2 + $0x154] ss:$8 sps:$4 sm:$0xff]  }
  0x23   :  { %917 = vmatmul.mubr.msk.bf16.vlgmr.msra.gmra.mrb[0].mxu0 %vm177_vm0, %v136_v38  ;;  %680 = vmatpush1.bf16.msra.mxu1 %v1045_v40  ;;  %v1081_v2 = vld [vmem:[#allocation2 + $0x80] ss:$8 sps:$4 sm:$0xff]   ;;  %v1082_v3 = vld [vmem:[#allocation2 + $0x94] ss:$8 sps:$4 sm:$0xff]   ;;  %v1080_v5 = vld [vmem:[#allocation2 + $0x164] ss:$8 sps:$4 sm:$0xff]  }
  0x24   :  { %225 = vmatpush1.bf16.msra.mxu0 %v1028_v37  ;;  %256 = vmatprep.mubr.bf16.mxu0 %v1189_v0  ;;  %v1072_v0 = vld [vmem:[#allocation2 + $0x150] ss:$8 sps:$4 sm:$0xff]   ;;  %v1088_v7 = vld [vmem:[#allocation2 + $0xa4] ss:$8 sps:$4 sm:$0xff]   ;;  %v1078_v8 = vld [vmem:[#allocation2 + $0x160] ss:$8 sps:$4 sm:$0xff]  }
  0x25   :  { %226 = vmatprep.subr.bf16.mxu0 %v1033_v39  ;;  %681 = vmatprep.subr.bf16.mxu1 %v1046_v41  ;;  %v1087_v6 = vld [vmem:[#allocation2 + $0x90] ss:$8 sps:$4 sm:$0xff]   ;;  %v1086_v9 = vld [vmem:[#allocation2 + $0x174] ss:$8 sps:$4 sm:$0xff]   ;;  %v1093_v10 = vld [vmem:[#allocation2 + $0xa0] ss:$8 sps:$4 sm:$0xff]  }
  0x26   :  { %v1094_v11 = vld [vmem:[#allocation2 + $0xb4] ss:$8 sps:$4 sm:$0xff]   ;;  %v1084_v12 = vld [vmem:[#allocation2 + $0x170] ss:$8 sps:$4 sm:$0xff]   ;;  %v1092_v13 = vld [vmem:[#allocation2 + $0x184] ss:$8 sps:$4 sm:$0xff]  }
  0x27   :  { %682 = vmatpush1.bf16.msra.mxu1 %v1051_v44  ;;  %v1099_v14 = vld [vmem:[#allocation2 + $0xb0] ss:$8 sps:$4 sm:$0xff]   ;;  %v1100_v15 = vld [vmem:[#allocation2 + $0xc4] ss:$8 sps:$4 sm:$0xff]   ;;  %v1090_v16 = vld [vmem:[#allocation2 + $0x180] ss:$8 sps:$4 sm:$0xff]  }
  0x28   :  { %227 = vmatpush1.bf16.msra.mxu0 %v1031_v42  ;;  %683 = vmatprep.subr.bf16.mxu1 %v1052_v45  ;;  %v1098_v17 = vld [vmem:[#allocation2 + $0x194] ss:$8 sps:$4 sm:$0xff]   ;;  %v1105_v18 = vld [vmem:[#allocation2 + $0xc0] ss:$8 sps:$4 sm:$0xff]   ;;  %v1096_v20 = vld [vmem:[#allocation2 + $0x190] ss:$8 sps:$4 sm:$0xff]  }
  0x29   :  { %718 = vmatprep.subr.bf16.mxu0 %v1044_v43  ;;  %v1106_v19 = vld [vmem:[#allocation2 + $0xd4] ss:$8 sps:$4 sm:$0xff]   ;;  %v1104_v21 = vld [vmem:[#allocation2 + $0x1a4] ss:$8 sps:$4 sm:$0xff]   ;;  %v1102_v22 = vld [vmem:[#allocation2 + $0x1a0] ss:$8 sps:$4 sm:$0xff]  }
  0x2a   :  { %v1110_v23 = vld [vmem:[#allocation2 + $0x1b4] ss:$8 sps:$4 sm:$0xff]   ;;  %v1108_v24 = vld [vmem:[#allocation2 + $0x1b0] ss:$8 sps:$4 sm:$0xff]   ;;  %v1112_v26 = vld [vmem:[#allocation2 + $0xe4] ss:$8 sps:$4 sm:$0xff]  }
  0x2b   :  { %918 = vmatmul.mubr.msk.bf16.vlgmr.msra.gmra.mrb[4].mxu0 %vm177_vm0, %v136_v38  ;;  %684 = vmatpush1.bf16.msra.mxu1 %v1057_v48  ;;  %v1111_v25 = vld [vmem:[#allocation2 + $0xd0] ss:$8 sps:$4 sm:$0xff]   ;;  %v1116_v27 = vld [vmem:[#allocation2 + $0x1c4] ss:$8 sps:$4 sm:$0xff]   ;;  %v1114_v28 = vld [vmem:[#allocation2 + $0x1c0] ss:$8 sps:$4 sm:$0xff]  }
  0x2c   :  { %719 = vmatpush1.bf16.msra.mxu0 %v1042_v46  ;;  %685 = vmatprep.subr.bf16.mxu1 %v1058_v49  ;;  %v1117_v29 = vld [vmem:[#allocation2 + $0xe0] ss:$8 sps:$4 sm:$0xff]   ;;  %v1118_v30 = vld [vmem:[#allocation2 + $0xf4] ss:$8 sps:$4 sm:$0xff]   ;;  %v1120_v32 = vld [vmem:[#allocation2 + $0x1d0] ss:$8 sps:$4 sm:$0xff]  }
  0x2d   :  { %720 = vmatprep.subr.bf16.mxu0 %v1050_v47  ;;  %v1122_v31 = vld [vmem:[#allocation2 + $0x1d4] ss:$8 sps:$4 sm:$0xff]   ;;  %v1123_v33 = vld [vmem:[#allocation2 + $0xf0] ss:$8 sps:$4 sm:$0xff]   ;;  %v1126_v34 = vld [vmem:[#allocation2 + $0x1e4] ss:$8 sps:$4 sm:$0xff]  }
  0x2e   :  { %v1124_v35 = vld [vmem:[#allocation2 + $0x1e0] ss:$8 sps:$4 sm:$0xff]   ;;  %v1129_v36 = vld [vmem:[#allocation2 + $0x1f4] ss:$8 sps:$4 sm:$0xff]   ;;  %v1127_v37 = vld [vmem:[#allocation2 + $0x1f0] ss:$8 sps:$4 sm:$0xff]  }
  0x2f   :  { %686 = vmatpush1.bf16.msra.mxu1 %v1063_v52  ;;  %v783_v38 = vld [vmem:[%s1439_s5 + $0x80] sm:$0xff]  ;;  %v784_v39 = vld [vmem:[%s1439_s5 + $0x88] sm:$0xff]  ;;  %v62_v41 = vsub.s32 0, %v1247_v4  ;;  %v66_v43 = vsub.s32 1, %v1247_v4  ;;  %v70_v49 = vsub.s32 2, %v1247_v4  ;;  %v74_v52 = vsub.s32 3, %v1247_v4 }
  0x30   :  { %721 = vmatpush1.bf16.msra.mxu0 %v1048_v50  ;;  %687 = vmatprep.subr.bf16.mxu1 %v1064_v53  ;;  %v807_v40 = vpack.c.bf16 %v784_v39, %v783_v38  ;;  %v58_v42 = vld [vmem:[%s1436_s2] sm:$0xf]  ;;  %v792_v38 = vld [vmem:[%s1439_s5 + $0xc8] sm:$0xff]  ;;  %v864_v4 = vand.u32 127, %v60_v1 }
  0x31   :  { %722 = vmatprep.subr.bf16.mxu0 %v1056_v51  ;;  %v63_v44 = vrot.slane %v58_v42, %v62_v41  ;;  %v67_v45 = vrot.slane %v58_v42, %v66_v43 }
  0x32   :  { %vm866_vm1 = vcmp.ge.s32.totalorder %v864_v4, 3  ;;  %vm867_vm2 = vcmp.lt.s32.totalorder %v864_v4, 7  ;;  %vm865_vm5 = vcmp.lt.s32.totalorder %v864_v4, 3 }
  0x33   :  { %688 = vmatpush1.bf16.msra.mxu1 %v1069_v56  ;;  %vm868_vm3 = vmand %vm866_vm1, %vm867_vm2 }
  0x34   :  { %723 = vmatpush1.bf16.msra.mxu0 %v1054_v54  ;;  %689 = vmatprep.subr.bf16.mxu1 %v1070_v57 }
  0x35   :  { %724 = vmatprep.subr.bf16.mxu0 %v1062_v55 }
  0x37   :  { %690 = vmatpush1.bf16.msra.mxu1 %v1075_v60  ;;  %v768_v60 = vld [vmem:[%s1439_s5 + $0x8] sm:$0xff] }
  0x38   :  { %725 = vmatpush1.bf16.msra.mxu0 %v1060_v58  ;;  %691 = vmatprep.subr.bf16.mxu1 %v1076_v61  ;;  %v71_v58 = vrot.slane %v58_v42, %v70_v49  ;;  %v778_v49 = vld [vmem:[%s1439_s5 + $0x58] sm:$0xff] }
  0x39   :  { %726 = vmatprep.subr.bf16.mxu0 %v1068_v59  ;;  %v767_v59 = vld [vmem:[%s1439_s5] sm:$0xff] }
  0x3b   :  { %692 = vmatpush1.bf16.msra.mxu1 %v1081_v2  ;;  %v786_v2 = vld [vmem:[%s1439_s5 + $0x98] sm:$0xff] }
  0x3c   :  { %727 = vmatpush1.bf16.msra.mxu0 %v1066_v62  ;;  %693 = vmatprep.subr.bf16.mxu1 %v1082_v3 }
  0x3d   :  { %728 = vmatprep.subr.bf16.mxu0 %v1074_v63  ;;  %v75_v63 = vrot.slane %v58_v42, %v74_v52  ;;  %v776_v42 = vld [vmem:[%s1439_s5 + $0x48] sm:$0xff] }
  0x3e   :  { %v796_v52 = vld [vmem:[%s1439_s5 + $0xe8] sm:$0xff] }
  0x3f   :  { %694 = vmatpush1.bf16.msra.mxu1 %v1087_v6 }
  0x40   :  { %729 = vmatpush1.bf16.msra.mxu0 %v1072_v0  ;;  %695 = vmatprep.subr.bf16.mxu1 %v1088_v7  ;;  %v785_v0 = vld [vmem:[%s1439_s5 + $0x90] sm:$0xff]  ;;  %v799_v7 = vpack.c.bf16 %v768_v60, %v767_v59 }
  0x41   :  { %730 = vmatprep.subr.bf16.mxu0 %v1080_v5  ;;  %v781_v60 = vld [vmem:[%s1439_s5 + $0x70] sm:$0xff] }
  0x43   :  { %696 = vmatpush1.bf16.msra.mxu1 %v1093_v10  ;;  %v808_v10 = vpack.c.bf16 %v786_v2, %v785_v0 }
  0x44   :  { %731 = vmatpush1.bf16.msra.mxu0 %v1078_v8  ;;  %697 = vmatprep.subr.bf16.mxu1 %v1094_v11  ;;  %v769_v11 = vld [vmem:[%s1439_s5 + $0x10] sm:$0xff] }
  0x45   :  { %732 = vmatprep.subr.bf16.mxu0 %v1086_v9 }
  0x47   :  { %698 = vmatpush1.bf16.msra.mxu1 %v1099_v14 }
  0x48   :  { %733 = vmatpush1.bf16.msra.mxu0 %v1084_v12  ;;  %699 = vmatprep.subr.bf16.mxu1 %v1100_v15  ;;  %v770_v12 = vld [vmem:[%s1439_s5 + $0x18] sm:$0xff]  ;;  %v787_v15 = vld [vmem:[%s1439_s5 + $0xa0] sm:$0xff] }
  0x49   :  { %734 = vmatprep.subr.bf16.mxu0 %v1092_v13 }
  0x4b   :  { %700 = vmatpush1.bf16.msra.mxu1 %v1105_v18 }
  0x4c   :  { %735 = vmatpush1.bf16.msra.mxu0 %v1090_v16  ;;  %701 = vmatprep.subr.bf16.mxu1 %v1106_v19  ;;  %v788_v16 = vld [vmem:[%s1439_s5 + $0xa8] sm:$0xff] }
  0x4d   :  { %736 = vmatprep.subr.bf16.mxu0 %v1098_v17 }
  0x4f   :  { %702 = vmatpush1.bf16.msra.mxu1 %v1111_v25  ;;  %v772_v25 = vld [vmem:[%s1439_s5 + $0x28] sm:$0xff] }
  0x50   :  { %737 = vmatpush1.bf16.msra.mxu0 %v1096_v20  ;;  %703 = vmatprep.subr.bf16.mxu1 %v1112_v26  ;;  %v800_v20 = vpack.c.bf16 %v770_v12, %v769_v11 }
  0x51   :  { %738 = vmatprep.subr.bf16.mxu0 %v1104_v21 }
  0x53   :  { %704 = vmatpush1.bf16.msra.mxu1 %v1117_v29  ;;  %v790_v29 = vld [vmem:[%s1439_s5 + $0xb8] sm:$0xff] }
  0x54   :  { %739 = vmatpush1.bf16.msra.mxu0 %v1102_v22  ;;  %705 = vmatprep.subr.bf16.mxu1 %v1118_v30 }
  0x55   :  { %740 = vmatprep.subr.bf16.mxu0 %v1110_v23  ;;  %v809_v23 = vpack.c.bf16 %v788_v16, %v787_v15 }
  0x57   :  { %706 = vmatpush1.bf16.msra.mxu1 %v1123_v33 }
  0x58   :  { %741 = vmatpush1.bf16.msra.mxu0 %v1108_v24  ;;  %984 = vmatprep.subr.bf16.mxu1 %v807_v40  ;;  %v771_v24 = vld [vmem:[%s1439_s5 + $0x20] sm:$0xff] }
  0x59   :  { %742 = vmatprep.subr.bf16.mxu0 %v1116_v27  ;;  %v775_v40 = vld [vmem:[%s1439_s5 + $0x40] sm:$0xff] }
  0x5c   :  { %743 = vmatpush1.bf16.msra.mxu0 %v1114_v28  ;;  %v789_v28 = vld [vmem:[%s1439_s5 + $0xb0] sm:$0xff] }
  0x5d   :  { %744 = vmatprep.subr.bf16.mxu0 %v1122_v31  ;;  %v810_v33 = vpack.c.bf16 %v790_v29, %v789_v28 }
  0x60   :  { %745 = vmatpush1.bf16.msra.mxu0 %v1120_v32  ;;  %v801_v32 = vpack.c.bf16 %v772_v25, %v771_v24  ;;  %v983_v25 = vld [vmem:[%s1440_s6] ss:$0 sm:$0xff] }
  0x61   :  { %746 = vmatprep.subr.bf16.mxu0 %v1126_v34  ;;  %v773_v34 = vld [vmem:[%s1439_s5 + $0x30] sm:$0xff] }
  0x64   :  { %747 = vmatpush1.bf16.msra.mxu0 %v1124_v35  ;;  %v774_v35 = vld [vmem:[%s1439_s5 + $0x38] sm:$0xff] }
  0x65   :  { %748 = vmatprep.subr.bf16.mxu0 %v1129_v36  ;;  %v802_v36 = vpack.c.bf16 %v774_v35, %v773_v34 }
  0x68   :  { %749 = vmatpush1.bf16.msra.mxu0 %v1127_v37  ;;  %v791_v37 = vld [vmem:[%s1439_s5 + $0xc0] sm:$0xff] }
  0x69   :  { %v811_v39 = vpack.c.bf16 %v792_v38, %v791_v37 }
  0xf6   :  { %v215_v46 = vpop.f32.mrb[0].mxu0 }
  0xf7   :  { %v216_v47 = vadd.f32 %v215_v46, %v63_v44  ;;  %v217_v48 = vpop.f32.mrb[1].mxu0  ;;  %v794_v46 = vld [vmem:[%s1439_s5 + $0xd8] sm:$0xff] }
  0xf8   :  { %v218_v50 = vadd.f32 %v217_v48, %v67_v45  ;;  %v219_v51 = vpop.f32.mrb[2].mxu0  ;;  %v777_v48 = vld [vmem:[%s1439_s5 + $0x50] sm:$0xff] }
  0xf9   :  { %v220_v53 = vadd.f32 %v219_v51, %v63_v44  ;;  %v221_v54 = vpop.f32.mrb[3].mxu0  ;;  %v267_v56 = vmax.f32 %v216_v47, 0.0  ;;  %v803_v44 = vpack.c.bf16 %v776_v42, %v775_v40  ;;  %v795_v51 = vld [vmem:[%s1439_s5 + $0xe0] sm:$0xff] }
  0xfa   :  { %v222_v55 = vadd.f32 %v221_v54, %v67_v45  ;;  %v268_v61 = vmax.f32 %v218_v50, 0.0  ;;  %v793_v45 = vld [vmem:[%s1439_s5 + $0xd0] sm:$0xff]  ;;  %v804_v50 = vpack.c.bf16 %v778_v49, %v777_v48  ;;  %v779_v54 = vld [vmem:[%s1439_s5 + $0x60] sm:$0xff] }
  0xfb   :  { %v271_v57 = vmax.f32 %v220_v53, 0.0  ;;  %v812_v47 = vpack.c.bf16 %v794_v46, %v793_v45  ;;  %v813_v53 = vpack.c.bf16 %v796_v52, %v795_v51 }
  0xfc   :  { %v272_v62 = vmax.f32 %v222_v55, 0.0  ;;  %v780_v55 = vld [vmem:[%s1439_s5 + $0x68] sm:$0xff] }
  0xfd   :  { %v275_v3 = vpack.c.bf16 %v271_v57, %v267_v56  ;;  %v805_v56 = vpack.c.bf16 %v780_v55, %v779_v54  ;;  %v797_v57 = vld [vmem:[%s1439_s5 + $0xf0] sm:$0xff] }
  0xfe   :  { %v258_v5 = vpop.f32.mrb[4].mxu0  ;;  %v276_v6 = vpack.c.bf16 %v272_v62, %v268_v61  ;;  %v782_v61 = vld [vmem:[%s1439_s5 + $0x78] sm:$0xff] }
  0xff   :  { %v259_v8 = vadd.f32 %v258_v5, %v71_v58  ;;  %v260_v9 = vpop.f32.mrb[5].mxu0  ;;  %v806_v62 = vpack.c.bf16 %v782_v61, %v781_v60 }
 0x100   :  { %v261_v13 = vadd.f32 %v260_v9, %v75_v63  ;;  %v262_v14 = vpop.f32.mrb[6].mxu0  ;;  %707 = vmatprep.mubr.bf16.mxu1 %v276_v6 }
 0x101   :  { %v263_v17 = vadd.f32 %v262_v14, %v71_v58  ;;  %v264_v18 = vpop.f32.mrb[7].mxu0  ;;  %708 = vmatmul.mubr.bf16.vlgmr.msra.gmra.mrb[0].mxu1 %v275_v3  ;;  %v269_v21 = vmax.f32 %v259_v8, 0.0  ;;  %v798_v58 = vld [vmem:[%s1439_s5 + $0xf8] sm:$0xff] }
 0x102   :  { %v265_v19 = vadd.f32 %v264_v18, %v75_v63  ;;  %985 = vmatpush3.bf16.msra.mxu1 %v799_v7  ;;  %v270_v26 = vmax.f32 %v261_v13, 0.0  ;;  %v814_v59 = vpack.c.bf16 %v798_v58, %v797_v57  ;;  %v343_v63 = vld [vmem:[%s1438_s4] sm:$0x3] }
 0x103   :  { %v273_v22 = vmax.f32 %v263_v17, 0.0  ;;  %986 = vmatprep.subr.bf16.mxu1 %v808_v10  ;;  %v348_v5 = vrot.slane %v343_v63, %v62_v41  ;;  %v352_v7 = vrot.slane %v343_v63, %v66_v43 }
 0x104   :  { %v274_v27 = vmax.f32 %v265_v19, 0.0 }
 0x105   :  { %v277_v30 = vpack.c.bf16 %v273_v22, %v269_v21 }
 0x106   :  { %v278_v31 = vpack.c.bf16 %v274_v27, %v270_v26  ;;  %987 = vmatpush3.bf16.msra.mxu1 %v800_v20 }
 0x107   :  { %988 = vmatprep.subr.bf16.mxu1 %v809_v23 }
 0x108   :  { %750 = vmatprep.mubr.bf16.mxu0 %v278_v31 }
 0x109   :  { %751 = vmatmul.mubr.bf16.vlgmr.msra.gmra.mrb[8].mxu0 %v277_v30 }
 0x10a   :  { %989 = vmatpush3.bf16.msra.mxu1 %v801_v32 }
 0x10b   :  { %990 = vmatprep.subr.bf16.mxu1 %v810_v33 }
 0x10e   :  { %991 = vmatpush3.bf16.msra.mxu1 %v802_v36 }
 0x10f   :  { %992 = vmatprep.subr.bf16.mxu1 %v811_v39 }
 0x112   :  { %993 = vmatpush3.bf16.msra.mxu1 %v803_v44 }
 0x113   :  { %994 = vmatprep.subr.bf16.mxu1 %v812_v47 }
 0x116   :  { %995 = vmatpush3.bf16.msra.mxu1 %v804_v50 }
 0x117   :  { %996 = vmatprep.subr.bf16.mxu1 %v813_v53 }
 0x11a   :  { %997 = vmatpush3.bf16.msra.mxu1 %v805_v56 }
 0x11b   :  { %998 = vmatprep.subr.bf16.mxu1 %v814_v59 }
 0x11e   :  { %999 = vmatpush3.bf16.msra.mxu1 %v806_v62 }
 0x1d4   :  { %v709_v0 = vpop.f32.mrb[0].mxu1 }
 0x1d5   :  { %v711_v2 = vpop.f32.mrb[1].mxu1  ;;  %v710_v8 = vadd.f32 %v709_v0, %v348_v5 }
 0x1d6   :  { %v713_v3 = vpop.f32.mrb[2].mxu1  ;;  %v712_v9 = vadd.f32 %v711_v2, %v352_v7 }
 0x1d7   :  { %v715_v6 = vpop.f32.mrb[3].mxu1  ;;  %v714_v11 = vadd.f32 %v713_v3, %v348_v5 }
 0x1d8   :  { %v716_v14 = vadd.f32 %v715_v6, %v352_v7 }
 0x1dc   :  { %v752_v10 = vpop.f32.mrb[8].mxu0 }
 0x1dd   :  { %v753_v12 = vadd.f32 %v752_v10, %v710_v8  ;;  %v754_v13 = vpop.f32.mrb[9].mxu0 }
 0x1de   :  { %v755_v15 = vadd.f32 %v754_v13, %v712_v9  ;;  %v756_v16 = vpop.f32.mrb[10].mxu0 }
 0x1df   :  { %v757_v17 = vadd.f32 %v756_v16, %v714_v11  ;;  %v758_v18 = vpop.f32.mrb[11].mxu0  ;;  %v761_v20 = vmax.f32 %v753_v12, 0.0 }
 0x1e0   :  { %v759_v19 = vadd.f32 %v758_v18, %v716_v14  ;;  %v762_v22 = vmax.f32 %v755_v15, 0.0 }
 0x1e1   :  { %v763_v21 = vmax.f32 %v757_v17, 0.0 }
 0x1e2   :  { %v764_v41 = vmax.f32 %v759_v19, 0.0 }
 0x1e3   :  { %v765_v23 = vpack.c.bf16 %v763_v21, %v761_v20 }
 0x1e4   :  { %v766_v24 = vpack.c.bf16 %v764_v41, %v762_v22 }
 0x1e6   :  { %854 = vmatprep.mubr.bf16.mxu1 %v766_v24 }
 0x1e7   :  { %855 = vmatmul.mubr.bf16.vlgmr.msra.gmra.mrb[4].mxu1 %v765_v23 }
 0x2ba   :  { %v1000_v43 = vpop.f32.mrb[4].mxu1 }
 0x2bb   :  { %v1001_v26 = vpop.f32.mrb[5].mxu1 }
 0x2bc   :  { %v1002_v27 = vadd.f32 %v1001_v26, %v1000_v43  ;;  %v1003_v28 = vpop.f32.mrb[6].mxu1 }
 0x2bd   :  { %v1004_v29 = vpop.f32.mrb[7].mxu1 }
 0x2be   :  { %v857_v30 = vadd.f32 %v1002_v27, %v983_v25  ;;  %v1005_v31 = vadd.f32 %v1004_v29, %v1003_v28 }
 0x2c0   :  { %v860_v32 = vadd.f32 %v1005_v31, %v983_v25  ;;  %v869_v33 = vmul.f32 %v857_v30, %v857_v30 }
 0x2c2   :  { %v871_v34 = vsel %vm868_vm3, %v869_v33, 0.0  ;;  %v870_v35 = vmul.f32 %v860_v32, %v860_v32 }
 0x2c3   :  { %v874_v1 = vsel %vm873_vm4, %v871_v34, 0.0 }
 0x2c4   :  { %875 = vadd.xlane.f32.xlu0 %v874_v1  ;;  %v872_v36 = vsel %vm868_vm3, %v870_v35, 0.0 }
 0x2c5   :  { %v877_v37 = vsel %vm873_vm4, %v872_v36, 0.0 }
 0x2c8   :  { %878 = vadd.xlane.f32.xlu0 %v877_v37 }
 0x351   :  { %v876_v38 = vpop.xlane.xlu0 %875 }
 0x352   :  { %v880_v39 = vadd.f32 1e-12, %v876_v38 }
 0x354   :  { %1130 = vrsqrt.f32 %v880_v39 }
 0x355   :  { %v879_v40 = vpop.xlane.xlu0 %878  ;;  %1132 = vtanh.f32 %v857_v30 }
 0x356   :  { %v881_v42 = vadd.f32 1e-12, %v879_v40 }
 0x358   :  { %1134 = vrsqrt.f32 %v881_v42 }
 0x359   :  { %1136 = vtanh.f32 %v860_v32 }
 0x35e   :  { %v1131_v44 = vpop.eup %1130 }
 0x35f   :  { %v886_v45 = vmul.f32 %v1131_v44, %v857_v30  ;;  %v1133_v46 = vpop.eup %1132 }
 0x361   :  { %v888_v47 = vsel %vm865_vm5, %v1133_v46, %v886_v45 }
 0x362   :  { %v1135_v48 = vpop.eup %1134  ;;  %890 = vst.msk [vmem:[#allocation5] sm:$0xff] %vm873_vm4, %v888_v47 }
 0x363   :  { %v887_v49 = vmul.f32 %v1135_v48, %v860_v32  ;;  %v1137_v50 = vpop.eup %1136 }
 0x365   :  { %v889_v51 = vsel %vm865_vm5, %v1137_v50, %v887_v49 }
 0x366   :  { %891 = vst.msk [vmem:[#allocation5 + $0x8] sm:$0xff] %vm873_vm4, %v889_v51 }
 0x367   :  { %896 = vsyncadd [#allocation4], 224  ;;  %s1191_s6 = smov [#allocation5]  }
 0x368   :  { %s897_s10 = sshll.u32 %s1191_s6, 4  ;;  %s898_s10 = int_to_ptr.vmem [resolvable:$true] %s897_s10 }
 0x369   :  { %s1160_s11 = scalar_lea.vmem %s898_s10, 32  ;;  %s1164_s12 = scalar_lea.vmem %s898_s10, 256 }
 0x36a   :  { %p1161_p8 = scmp.ne.s32.totalorder %s898_s10, %s1160_s11  ;;  %p1165_p9 = scmp.lt.s32.totalorder %s898_s10, %s898_s10 }
 0x36b   :  { %p1166_p10 = scmp.lt.s32.totalorder %s1164_s12, %s1160_s11 }
 0x36d   :  { %p1167_p11 = por %p1166_p10, %p1165_p9 }
 0x36f   :  { %p1168_p12 = pnand %p1167_p11, %p1161_p8 }
 0x371   :  { %1171 = shalt.err (!%p1168_p12)
}
 0x372   :  { %s1172_s15 = scalar_lea.hbm %s1441_s7, 32 }
 0x373   :  { %p1173_p13 = scmp.ne.s32.totalorder %s1441_s7, %s1172_s15  ;;  %p1176_p0 = scmp.lt.u32.totalorder %s1172_s15, %s1441_s7 }
 0x375   :  { %p1178_p1 = pnand %p1176_p0, %p1173_p13 }
 0x377   :  { %1181 = shalt.err (!%p1178_p1)
}
 0x378   :  { %s1192_s3 = smov 32   ;;  %s1193_s19 = smov 2  }
 0x379   :  { %903 = dma.vmem_to_hbm [thread:$0]  %s898_s10, 32, %s1441_s7, [#allocation4], %s1192_s3, %s1192_s3, %s1193_s19  }
 0x37a   :  { %1184 = dma.done.wait [#allocation4], 256  }
 0x37b   :  { %1185 = vsyncadd [#allocation4], 4294967040 }
 0x37c   :  { %907 = vsyncpa [#allocation3], 1 }
 0x37d   :  { %908 = vsyncpa [#allocation4], 1 }

</bundles_post_ra>
